<compile_context>
chip_gen: v7x
topology: tpu7x:2x2x1
jax: 0.10.0
libtpu: 0.0.40
codegen_flags: <defaults>
</compile_context>

<pallas_src>
import math

import jax
import jax.numpy as jnp
from jax.experimental import pallas as pl
from jax.experimental.pallas import tpu as pltpu

_NEG_INF = -1e30
_LN_EPS = 1e-5                      # PyTorch nn.LayerNorm default
_MLP_CHUNK = 512                    # hidden-dim chunk for the fused MLP


def _layer_norm(h, g, b):
    mu = jnp.mean(h, axis=-1, keepdims=True)
    var = jnp.mean(jnp.square(h - mu), axis=-1, keepdims=True)
    return (h - mu) * jax.lax.rsqrt(var + _LN_EPS) * g + b


def _gelu_tanh(h):
    # nn.GELU(approximate='tanh')
    return 0.5 * h * (1.0 + jnp.tanh(math.sqrt(2.0 / math.pi)
                                     * (h + 0.044715 * h * h * h)))


def _tpu_vmem_capacity_bytes():
    """Per-generation VMEM capacity; conservative fallback if unavailable."""
    try:
        return int(pltpu.get_tpu_info().vmem_capacity_bytes)
    except Exception:
        return 64 * 1024 * 1024      # v7x per-core VMEM (safe lower bound)


# ---------------------------------------------------------------------------
# Kernel 1: LayerNorm1 + QKV projections, head-major [B, H, T, D] outputs.
# ---------------------------------------------------------------------------
def _ln_qkv_kernel(x_ref, g_ref, b_ref,
                   wq_ref, bq_ref, wk_ref, bk_ref, wv_ref, bv_ref,
                   q_ref, k_ref, v_ref):
    _, H, TQ, D = q_ref.shape
    x = x_ref[0].astype(jnp.float32)                              # (TQ, C)
    h = _layer_norm(x, g_ref[0], b_ref[0]).astype(jnp.bfloat16)

    # Three (TQ,C)@(C,C) dots kept separate (fusing to one (C,3C) dot would
    # force an in-kernel lane split of the product; the single-weight-buffer
    # benefit is already captured by Buffered(1) on the weight specs).
    def project(w_ref, bias_ref, out_ref):
        y = jnp.dot(h, w_ref[...], preferred_element_type=jnp.float32) + bias_ref[0]
        # (TQ, C) -> (TQ, H, D) -> (H, TQ, D): head split done once here, in
        # VMEM, instead of an extra HBM pass in the wrapper.
        out_ref[0] = jnp.swapaxes(y.reshape(TQ, H, D), 0, 1).astype(out_ref.dtype)

    project(wq_ref, bq_ref, q_ref)   # pre-scaled by 1/sqrt(D)
    project(wk_ref, bk_ref, k_ref)
    project(wv_ref, bv_ref, v_ref)


# ---------------------------------------------------------------------------
# Kernel 2: flash causal attention over a triangular (qi, ki) schedule, fused
#           with attn projection + residual + LN2 + chunked GELU MLP + residual.
# ---------------------------------------------------------------------------
def _attn_mlp_kernel(qi_map_ref, ki_map_ref,            # scalar-prefetch (SMEM)
                     q_ref, k_ref, v_ref, x_ref,
                     ln2_g_ref, ln2_b_ref,
                     w_ap_ref, b_ap_ref,
                     w_fc_ref, b_fc_ref,
                     w_mp_ref, b_mp_ref,
                     o_ref,
                     m_ref, l_ref, acc_ref):
    _, H, TQ, D = q_ref.shape
    TK = k_ref.shape[2]
    C = x_ref.shape[2]
    F = w_fc_ref.shape[1]                                # 4 * C

    s = pl.program_id(1)
    qi = qi_map_ref[s]
    ki = ki_map_ref[s]

    @pl.when(ki == 0)
    def _init():
        m_ref[...] = jnp.full(m_ref.shape, _NEG_INF, dtype=m_ref.dtype)
        l_ref[...] = jnp.zeros(l_ref.shape, dtype=l_ref.dtype)
        acc_ref[...] = jnp.zeros(acc_ref.shape, dtype=acc_ref.dtype)

    def _flash_step(masked):
        q = q_ref[0]                                     # (H, TQ, D) bf16 (pre-scaled)
        k = k_ref[0]                                     # (H, TK, D) bf16
        v = v_ref[0]                                     # (H, TK, D) bf16
        sc = jnp.einsum('hqd,hkd->hqk', q, k,
                        preferred_element_type=jnp.float32)       # (H, TQ, TK) f32
        if masked:
            # Diagonal tile only (TQ == TK): local lower-triangular mask.
            rows = jax.lax.broadcasted_iota(jnp.int32, (TQ, TK), 0)
            cols = jax.lax.broadcasted_iota(jnp.int32, (TQ, TK), 1)
            sc = jnp.where((rows >= cols)[None, :, :], sc, _NEG_INF)
        m_prev = m_ref[...]
        m_new = jnp.maximum(m_prev, jnp.max(sc, axis=-1, keepdims=True))
        alpha = jnp.exp(m_prev - m_new)
        p = jnp.exp(sc - m_new)
        l_ref[...] = alpha * l_ref[...] + jnp.sum(p, axis=-1, keepdims=True)
        acc_ref[...] = alpha * acc_ref[...] + jnp.einsum(
            'hqk,hkd->hqd', p.astype(jnp.bfloat16), v,
            preferred_element_type=jnp.float32)
        m_ref[...] = m_new

    # Interior key tiles: fully below the causal diagonal -> no mask work.
    @pl.when(ki < qi)
    def _interior():
        _flash_step(masked=False)

    # Diagonal key tile: masked flash step, then the fused epilogue (this is
    # the last key tile for this query tile under the triangular schedule).
    @pl.when(ki == qi)
    def _diag_and_epilogue():
        _flash_step(masked=True)

        # Exact normalization (runs once per (b, qi) tile, essentially free).
        y = acc_ref[...] / l_ref[...]                    # (H, TQ, D) f32
        y = jnp.swapaxes(y, 0, 1).reshape(TQ, C)         # (TQ, C)
        y = jnp.dot(y.astype(jnp.bfloat16), w_ap_ref[...],
                    preferred_element_type=jnp.float32) + b_ap_ref[0]
        xr = x_ref[0].astype(jnp.float32) + y            # residual 1 (f32)

        h2 = _layer_norm(xr, ln2_g_ref[0], ln2_b_ref[0]).astype(jnp.bfloat16)

        # Chunk the 4C hidden dim so the (TQ, 4C) f32 intermediate never lives
        # all at once (bounds spills).  Static slices -> clean lowering; the
        # chunk offsets are 128-aligned whenever F is a multiple of 512.
        chunk = _MLP_CHUNK if (F % _MLP_CHUNK == 0) else F
        mo = jnp.zeros((TQ, C), jnp.float32)
        for j in range(F // chunk):
            sl = slice(j * chunk, (j + 1) * chunk)
            hj = jnp.dot(h2, w_fc_ref[:, sl],
                         preferred_element_type=jnp.float32) + b_fc_ref[0, sl]
            hj = _gelu_tanh(hj)
            mo = mo + jnp.dot(hj.astype(jnp.bfloat16), w_mp_ref[sl, :],
                              preferred_element_type=jnp.float32)

        o_ref[0] = (xr + mo + b_mp_ref[0]).astype(o_ref.dtype)    # residual 2


# ---------------------------------------------------------------------------
# Wrapper
# ---------------------------------------------------------------------------
def gpt_block(x, params, n_head, *, seq_tile=None):
    B, T, C = x.shape
    assert C % n_head == 0
    D = C // n_head

    # Per-generation VMEM budget / tile size (128 MiB chips -> larger tiles).
    vmem_cap = _tpu_vmem_capacity_bytes()
    vmem_limit = min((vmem_cap * 3) // 4, 100 * 1024 * 1024)
    if seq_tile is None:
        seq_tile = 512 if vmem_cap >= 100 * 1024 * 1024 else 256

    TQ = T if T <= seq_tile else seq_tile
    assert T % TQ == 0, "sequence length must be divisible by the tile size"
    TK = TQ
    nq = T // TQ

    f32, bf16 = jnp.float32, jnp.bfloat16
    sm_scale = 1.0 / math.sqrt(D)

    # Split fused c_attn weight in the wrapper (no lane slicing in-kernel) and
    # fold the softmax scale into the Q projection.
    w_attn = params["w_attn"].astype(f32)
    b_attn = params["b_attn"].astype(f32)
    w_q = (w_attn[:, 0 * C:1 * C] * sm_scale).astype(bf16)
    w_k = w_attn[:, 1 * C:2 * C].astype(bf16)
    w_v = w_attn[:, 2 * C:3 * C].astype(bf16)
    b_q = b_attn[:, 0 * C:1 * C] * sm_scale
    b_k = b_attn[:, 1 * C:2 * C]
    b_v = b_attn[:, 2 * C:3 * C]

    single = pl.Buffered(1)   # grid-invariant operands: one resident buffer

    # ---- kernel 1: LN1 + QKV projection, head-major outputs ---------------
    x_spec = pl.BlockSpec((1, TQ, C), lambda b, t: (b, t, 0))
    head_spec = pl.BlockSpec((1, n_head, TQ, D), lambda b, t: (b, 0, t, 0))

    def const_spec(shape):
        return pl.BlockSpec(shape, lambda b, t: (0, 0), pipeline_mode=single)

    q, k, v = pl.pallas_call(
        _ln_qkv_kernel,
        out_shape=(jax.ShapeDtypeStruct((B, n_head, T, D), bf16),) * 3,
        grid_spec=pltpu.PrefetchScalarGridSpec(
            num_scalar_prefetch=0,
            grid=(B, nq),
            in_specs=[
                x_spec,
                const_spec((1, C)),            # ln1 gamma
                const_spec((1, C)),            # ln1 beta
                const_spec((C, C)),            # w_q (pre-scaled)
                const_spec((1, C)),            # b_q (pre-scaled)
                const_spec((C, C)),            # w_k
                const_spec((1, C)),            # b_k
                const_spec((C, C)),            # w_v
                const_spec((1, C)),            # b_v
            ],
            out_specs=(head_spec, head_spec, head_spec),
        ),
        compiler_params=pltpu.CompilerParams(
            dimension_semantics=("parallel", "parallel"),
            vmem_limit_bytes=vmem_limit),
    )(x,
      params["ln1_g"].astype(f32), params["ln1_b"].astype(f32),
      w_q, b_q, w_k, b_k, w_v, b_v)

    # ---- kernel 2: flash attention + proj + residual + LN2 + MLP ----------
    # Lower-triangular (qi, ki) schedule via scalar prefetch: no grid steps
    # (and no DMAs) above the causal diagonal.
    pairs = [(qi, ki) for qi in range(nq) for ki in range(qi + 1)]
    qi_steps = jnp.asarray([p[0] for p in pairs], dtype=jnp.int32)
    ki_steps = jnp.asarray([p[1] for p in pairs], dtype=jnp.int32)
    n_steps = len(pairs)

    def wspec(shape):
        return pl.BlockSpec(shape, lambda b, s, qm, km: (0, 0), pipeline_mode=single)

    out = pl.pallas_call(
        _attn_mlp_kernel,
        out_shape=jax.ShapeDtypeStruct((B, T, C), x.dtype),
        grid_spec=pltpu.PrefetchScalarGridSpec(
            num_scalar_prefetch=2,
            grid=(B, n_steps),
            in_specs=[
                pl.BlockSpec((1, n_head, TQ, D),
                             lambda b, s, qm, km: (b, 0, qm[s], 0)),   # q
                pl.BlockSpec((1, n_head, TK, D),
                             lambda b, s, qm, km: (b, 0, km[s], 0)),   # k
                pl.BlockSpec((1, n_head, TK, D),
                             lambda b, s, qm, km: (b, 0, km[s], 0)),   # v
                pl.BlockSpec((1, TQ, C),
                             lambda b, s, qm, km: (b, qm[s], 0)),      # x (residual)
                wspec((1, C)), wspec((1, C)),          # ln2 gamma / beta
                wspec((C, C)), wspec((1, C)),          # attn c_proj W / b
                wspec((C, 4 * C)), wspec((1, 4 * C)),  # mlp c_fc W / b
                wspec((4 * C, C)), wspec((1, C)),      # mlp c_proj W / b
            ],
            out_specs=pl.BlockSpec((1, TQ, C),
                                   lambda b, s, qm, km: (b, qm[s], 0)),
            scratch_shapes=[
                pltpu.VMEM((n_head, TQ, 1), jnp.float32),    # running max m
                pltpu.VMEM((n_head, TQ, 1), jnp.float32),    # running sum l
                pltpu.VMEM((n_head, TQ, D), jnp.float32),    # output accumulator
            ]),
        compiler_params=pltpu.CompilerParams(
            dimension_semantics=("parallel", "arbitrary"),
            vmem_limit_bytes=vmem_limit),
    )(qi_steps, ki_steps, q, k, v, x,
      params["ln2_g"].astype(f32), params["ln2_b"].astype(f32),
      params["w_aproj"].astype(bf16), params["b_aproj"].astype(f32),
      params["w_fc"].astype(bf16), params["b_fc"].astype(f32),
      params["w_mproj"].astype(bf16), params["b_mproj"].astype(f32))
    return out


# ---------------------------------------------------------------------------
# Pure-JAX reference (mirrors the PyTorch forward) for validation
# ---------------------------------------------------------------------------
def gpt_block_reference(x, params, n_head):
    B, T, C = x.shape
    D = C // n_head

    def layer_norm(h, g, b):
        mu = jnp.mean(h, axis=-1, keepdims=True)
        var = jnp.mean((h - mu) ** 2, axis=-1, keepdims=True)
        return (h - mu) / jnp.sqrt(var + _LN_EPS) * g[0] + b[0]

    h1 = layer_norm(x, params["ln1_g"], params["ln1_b"])
    qkv = h1 @ params["w_attn"] + params["b_attn"][0]
    q, k, v = jnp.split(qkv, 3, axis=-1)
    q = q.reshape(B, T, n_head, D).transpose(0, 2, 1, 3)
    k = k.reshape(B, T, n_head, D).transpose(0, 2, 1, 3)
    v = v.reshape(B, T, n_head, D).transpose(0, 2, 1, 3)
    s = jnp.einsum('bhtd,bhsd->bhts', q, k) / math.sqrt(D)
    mask = jnp.tril(jnp.ones((T, T), dtype=bool))
    s = jnp.where(mask[None, None], s, _NEG_INF)
    p = jax.nn.softmax(s, axis=-1)
    y = jnp.einsum('bhts,bhsd->bhtd', p, v).transpose(0, 2, 1, 3).reshape(B, T, C)
    y = y @ params["w_aproj"] + params["b_aproj"][0]
    x = x + y

    h2 = layer_norm(x, params["ln2_g"], params["ln2_b"])
    h = h2 @ params["w_fc"] + params["b_fc"][0]
    h = 0.5 * h * (1.0 + jnp.tanh(math.sqrt(2.0 / math.pi) * (h + 0.044715 * h ** 3)))
    m = h @ params["w_mproj"] + params["b_mproj"][0]
    return x + m


def init_params(key, n_embd):
    C = n_embd
    ks = jax.random.split(key, 6)
    scale = 0.02
    return {
        "ln1_g": jnp.ones((1, C), jnp.float32),
        "ln1_b": jnp.zeros((1, C), jnp.float32),
        "w_attn": scale * jax.random.normal(ks[0], (C, 3 * C), jnp.float32),
        "b_attn": jnp.zeros((1, 3 * C), jnp.float32),
        "w_aproj": scale * jax.random.normal(ks[1], (C, C), jnp.float32),
        "b_aproj": jnp.zeros((1, C), jnp.float32),
        "ln2_g": jnp.ones((1, C), jnp.float32),
        "ln2_b": jnp.zeros((1, C), jnp.float32),
        "w_fc": scale * jax.random.normal(ks[2], (C, 4 * C), jnp.float32),
        "b_fc": jnp.zeros((1, 4 * C), jnp.float32),
        "w_mproj": scale * jax.random.normal(ks[3], (4 * C, C), jnp.float32),
        "b_mproj": jnp.zeros((1, C), jnp.float32),
    }


if __name__ == "__main__":
    B, T, C, n_head = 2, 8, 32, 4   # block_size >= T; head_dim = 8

    key = jax.random.PRNGKey(0)
    k_x, k_p = jax.random.split(key)
    x = jax.random.normal(k_x, (B, T, C), jnp.float32)
    params = init_params(k_p, C)

    out = gpt_block(x, params, n_head)
    out = jax.block_until_ready(out)

    ref = gpt_block_reference(x, params, n_head)
    assert out.shape == (B, T, C)
    max_err = jnp.max(jnp.abs(out - ref))
    # bf16 MXU operands with f32 accumulation -> modest tolerance vs f32 ref
    assert jnp.allclose(out, ref, rtol=2e-2, atol=2e-3), f"max abs err {max_err}"

    print("KERNEL_OK")
</pallas_src>

<mosaic_0001>
module attributes {stable_mosaic.version = 11 : i64} {
  func.func @_ln_qkv_kernel(%arg0: i32, %arg1: i32, %arg2: memref<1x8x32xf32, #tpu.memory_space<vmem>>, %arg3: memref<1x32xf32, #tpu.memory_space<vmem>>, %arg4: memref<1x32xf32, #tpu.memory_space<vmem>>, %arg5: memref<32x32xbf16, #tpu.memory_space<vmem>>, %arg6: memref<1x32xf32, #tpu.memory_space<vmem>>, %arg7: memref<32x32xbf16, #tpu.memory_space<vmem>>, %arg8: memref<1x32xf32, #tpu.memory_space<vmem>>, %arg9: memref<32x32xbf16, #tpu.memory_space<vmem>>, %arg10: memref<1x32xf32, #tpu.memory_space<vmem>>, %arg11: memref<1x4x8x8xbf16, #tpu.memory_space<vmem>>, %arg12: memref<1x4x8x8xbf16, #tpu.memory_space<vmem>>, %arg13: memref<1x4x8x8xbf16, #tpu.memory_space<vmem>>) attributes {dimension_semantics = [#tpu.dimension_semantics<parallel>, #tpu.dimension_semantics<parallel>], iteration_bounds = array<i64: 2, 1>, scalar_prefetch = 0 : i64, scratch_operands = 0 : i64, tpu.core_type = #tpu.core_type<tc>, window_params = [{transform_indices = @transform_0, window_bounds = array<i64: 1, 8, 32>}, {pipeline_mode = #tpu.pipeline_mode<synchronous>, transform_indices = @transform_1, window_bounds = array<i64: 1, 32>}, {pipeline_mode = #tpu.pipeline_mode<synchronous>, transform_indices = @transform_2, window_bounds = array<i64: 1, 32>}, {pipeline_mode = #tpu.pipeline_mode<synchronous>, transform_indices = @transform_3, window_bounds = array<i64: 32, 32>}, {pipeline_mode = #tpu.pipeline_mode<synchronous>, transform_indices = @transform_4, window_bounds = array<i64: 1, 32>}, {pipeline_mode = #tpu.pipeline_mode<synchronous>, transform_indices = @transform_5, window_bounds = array<i64: 32, 32>}, {pipeline_mode = #tpu.pipeline_mode<synchronous>, transform_indices = @transform_6, window_bounds = array<i64: 1, 32>}, {pipeline_mode = #tpu.pipeline_mode<synchronous>, transform_indices = @transform_7, window_bounds = array<i64: 32, 32>}, {pipeline_mode = #tpu.pipeline_mode<synchronous>, transform_indices = @transform_8, window_bounds = array<i64: 1, 32>}, {transform_indices = @transform_9, window_bounds = array<i64: 1, 4, 8, 8>}, {transform_indices = @transform_10, window_bounds = array<i64: 1, 4, 8, 8>}, {transform_indices = @transform_11, window_bounds = array<i64: 1, 4, 8, 8>}]} {
    %c0 = arith.constant 0 : index
    %c0_0 = arith.constant 0 : index
    %c0_1 = arith.constant 0 : index
    %0 = vector.load %arg2[%c0, %c0_0, %c0_1] : memref<1x8x32xf32, #tpu.memory_space<vmem>>, vector<1x8x32xf32>
    %1 = vector.shape_cast %0 : vector<1x8x32xf32> to vector<8x32xf32>
    %c0_2 = arith.constant 0 : index
    %c0_3 = arith.constant 0 : index
    %2 = vector.load %arg3[%c0_2, %c0_3] : memref<1x32xf32, #tpu.memory_space<vmem>>, vector<1x32xf32>
    %3 = vector.shape_cast %2 : vector<1x32xf32> to vector<32xf32>
    %c0_4 = arith.constant 0 : index
    %c0_5 = arith.constant 0 : index
    %4 = vector.load %arg4[%c0_4, %c0_5] : memref<1x32xf32, #tpu.memory_space<vmem>>, vector<1x32xf32>
    %5 = vector.shape_cast %4 : vector<1x32xf32> to vector<32xf32>
    %cst = arith.constant dense<0.000000e+00> : vector<8xf32>
    %6 = vector.multi_reduction <add>, %1, %cst [1] : vector<8x32xf32> to vector<8xf32>
    %7 = vector.shape_cast %6 : vector<8xf32> to vector<8x1xf32>
    %cst_6 = arith.constant 3.200000e+01 : f32
    %8 = vector.broadcast %cst_6 : f32 to vector<8x1xf32>
    %9 = arith.divf %7, %8 : vector<8x1xf32>
    %10 = vector.broadcast %9 : vector<8x1xf32> to vector<8x32xf32>
    %11 = arith.subf %1, %10 : vector<8x32xf32>
    %12 = arith.mulf %11, %11 : vector<8x32xf32>
    %cst_7 = arith.constant dense<0.000000e+00> : vector<8xf32>
    %13 = vector.multi_reduction <add>, %12, %cst_7 [1] : vector<8x32xf32> to vector<8xf32>
    %14 = vector.shape_cast %13 : vector<8xf32> to vector<8x1xf32>
    %cst_8 = arith.constant 3.200000e+01 : f32
    %15 = vector.broadcast %cst_8 : f32 to vector<8x1xf32>
    %16 = arith.divf %14, %15 : vector<8x1xf32>
    %17 = vector.broadcast %9 : vector<8x1xf32> to vector<8x32xf32>
    %18 = arith.subf %1, %17 : vector<8x32xf32>
    %cst_9 = arith.constant 9.99999974E-6 : f32
    %19 = vector.broadcast %cst_9 : f32 to vector<8x1xf32>
    %20 = arith.addf %16, %19 : vector<8x1xf32>
    %21 = math.rsqrt %20 : vector<8x1xf32>
    %22 = vector.broadcast %21 : vector<8x1xf32> to vector<8x32xf32>
    %23 = arith.mulf %18, %22 : vector<8x32xf32>
    %24 = vector.shape_cast %3 : vector<32xf32> to vector<1x32xf32>
    %25 = vector.broadcast %24 : vector<1x32xf32> to vector<8x32xf32>
    %26 = arith.mulf %23, %25 : vector<8x32xf32>
    %27 = vector.shape_cast %5 : vector<32xf32> to vector<1x32xf32>
    %28 = vector.broadcast %27 : vector<1x32xf32> to vector<8x32xf32>
    %29 = arith.addf %26, %28 : vector<8x32xf32>
    %30 = arith.truncf %29 : vector<8x32xf32> to vector<8x32xbf16>
    %c0_10 = arith.constant 0 : index
    %c0_11 = arith.constant 0 : index
    %31 = vector.load %arg5[%c0_10, %c0_11] : memref<32x32xbf16, #tpu.memory_space<vmem>>, vector<32x32xbf16>
    %cst_12 = arith.constant dense<0.000000e+00> : vector<8x32xf32>
    %32 = tpu.matmul %30, %31, %cst_12 {dimension_numbers = #tpu.dot_dimension_numbers<[1], [0], [0], [1], [0, 0, 1, 1], [], []>} : vector<8x32xbf16>, vector<32x32xbf16>, vector<8x32xf32> -> vector<8x32xf32>
    %c0_13 = arith.constant 0 : index
    %c0_14 = arith.constant 0 : index
    %33 = vector.load %arg6[%c0_13, %c0_14] : memref<1x32xf32, #tpu.memory_space<vmem>>, vector<1x32xf32>
    %34 = vector.shape_cast %33 : vector<1x32xf32> to vector<32xf32>
    %35 = vector.shape_cast %34 : vector<32xf32> to vector<1x32xf32>
    %36 = vector.broadcast %35 : vector<1x32xf32> to vector<8x32xf32>
    %37 = arith.addf %32, %36 : vector<8x32xf32>
    %38 = vector.shape_cast %37 : vector<8x32xf32> to vector<8x4x8xf32>
    %39 = tpu.transpose %38, [1, 0, 2] : vector<8x4x8xf32> -> vector<4x8x8xf32>
    %40 = arith.truncf %39 : vector<4x8x8xf32> to vector<4x8x8xbf16>
    %c0_15 = arith.constant 0 : index
    %c0_16 = arith.constant 0 : index
    %c0_17 = arith.constant 0 : index
    %c0_18 = arith.constant 0 : index
    %41 = vector.load %arg11[%c0_15, %c0_16, %c0_17, %c0_18] : memref<1x4x8x8xbf16, #tpu.memory_space<vmem>>, vector<1x4x8x8xbf16>
    %42 = vector.shape_cast %41 : vector<1x4x8x8xbf16> to vector<4x8x8xbf16>
    %43 = vector.shape_cast %40 : vector<4x8x8xbf16> to vector<1x4x8x8xbf16>
    tpu.vector_store %arg11[%c0_15, %c0_16, %c0_17, %c0_18], %43 {strides = array<i32>} : memref<1x4x8x8xbf16, #tpu.memory_space<vmem>>, vector<1x4x8x8xbf16>,
    %c0_19 = arith.constant 0 : index
    %c0_20 = arith.constant 0 : index
    %44 = vector.load %arg7[%c0_19, %c0_20] : memref<32x32xbf16, #tpu.memory_space<vmem>>, vector<32x32xbf16>
    %cst_21 = arith.constant dense<0.000000e+00> : vector<8x32xf32>
    %45 = tpu.matmul %30, %44, %cst_21 {dimension_numbers = #tpu.dot_dimension_numbers<[1], [0], [0], [1], [0, 0, 1, 1], [], []>} : vector<8x32xbf16>, vector<32x32xbf16>, vector<8x32xf32> -> vector<8x32xf32>
    %c0_22 = arith.constant 0 : index
    %c0_23 = arith.constant 0 : index
    %46 = vector.load %arg8[%c0_22, %c0_23] : memref<1x32xf32, #tpu.memory_space<vmem>>, vector<1x32xf32>
    %47 = vector.shape_cast %46 : vector<1x32xf32> to vector<32xf32>
    %48 = vector.shape_cast %47 : vector<32xf32> to vector<1x32xf32>
    %49 = vector.broadcast %48 : vector<1x32xf32> to vector<8x32xf32>
    %50 = arith.addf %45, %49 : vector<8x32xf32>
    %51 = vector.shape_cast %50 : vector<8x32xf32> to vector<8x4x8xf32>
    %52 = tpu.transpose %51, [1, 0, 2] : vector<8x4x8xf32> -> vector<4x8x8xf32>
    %53 = arith.truncf %52 : vector<4x8x8xf32> to vector<4x8x8xbf16>
    %c0_24 = arith.constant 0 : index
    %c0_25 = arith.constant 0 : index
    %c0_26 = arith.constant 0 : index
    %c0_27 = arith.constant 0 : index
    %54 = vector.load %arg12[%c0_24, %c0_25, %c0_26, %c0_27] : memref<1x4x8x8xbf16, #tpu.memory_space<vmem>>, vector<1x4x8x8xbf16>
    %55 = vector.shape_cast %54 : vector<1x4x8x8xbf16> to vector<4x8x8xbf16>
    %56 = vector.shape_cast %53 : vector<4x8x8xbf16> to vector<1x4x8x8xbf16>
    tpu.vector_store %arg12[%c0_24, %c0_25, %c0_26, %c0_27], %56 {strides = array<i32>} : memref<1x4x8x8xbf16, #tpu.memory_space<vmem>>, vector<1x4x8x8xbf16>,
    %c0_28 = arith.constant 0 : index
    %c0_29 = arith.constant 0 : index
    %57 = vector.load %arg9[%c0_28, %c0_29] : memref<32x32xbf16, #tpu.memory_space<vmem>>, vector<32x32xbf16>
    %cst_30 = arith.constant dense<0.000000e+00> : vector<8x32xf32>
    %58 = tpu.matmul %30, %57, %cst_30 {dimension_numbers = #tpu.dot_dimension_numbers<[1], [0], [0], [1], [0, 0, 1, 1], [], []>} : vector<8x32xbf16>, vector<32x32xbf16>, vector<8x32xf32> -> vector<8x32xf32>
    %c0_31 = arith.constant 0 : index
    %c0_32 = arith.constant 0 : index
    %59 = vector.load %arg10[%c0_31, %c0_32] : memref<1x32xf32, #tpu.memory_space<vmem>>, vector<1x32xf32>
    %60 = vector.shape_cast %59 : vector<1x32xf32> to vector<32xf32>
    %61 = vector.shape_cast %60 : vector<32xf32> to vector<1x32xf32>
    %62 = vector.broadcast %61 : vector<1x32xf32> to vector<8x32xf32>
    %63 = arith.addf %58, %62 : vector<8x32xf32>
    %64 = vector.shape_cast %63 : vector<8x32xf32> to vector<8x4x8xf32>
    %65 = tpu.transpose %64, [1, 0, 2] : vector<8x4x8xf32> -> vector<4x8x8xf32>
    %66 = arith.truncf %65 : vector<4x8x8xf32> to vector<4x8x8xbf16>
    %c0_33 = arith.constant 0 : index
    %c0_34 = arith.constant 0 : index
    %c0_35 = arith.constant 0 : index
    %c0_36 = arith.constant 0 : index
    %67 = vector.load %arg13[%c0_33, %c0_34, %c0_35, %c0_36] : memref<1x4x8x8xbf16, #tpu.memory_space<vmem>>, vector<1x4x8x8xbf16>
    %68 = vector.shape_cast %67 : vector<1x4x8x8xbf16> to vector<4x8x8xbf16>
    %69 = vector.shape_cast %66 : vector<4x8x8xbf16> to vector<1x4x8x8xbf16>
    tpu.vector_store %arg13[%c0_33, %c0_34, %c0_35, %c0_36], %69 {strides = array<i32>} : memref<1x4x8x8xbf16, #tpu.memory_space<vmem>>, vector<1x4x8x8xbf16>,
    return
  }
  func.func @transform_0(%arg0: i32, %arg1: i32) -> (i32, i32, i32) {
    %c0_i32 = arith.constant 0 : i32
    %c0_i32_0 = arith.constant 0 : i32
    return %arg0, %arg1, %c0_i32 : i32, i32, i32
  }
  func.func @transform_1(%arg0: i32, %arg1: i32) -> (i32, i32) {
    %c0_i32 = arith.constant 0 : i32
    %c0_i32_0 = arith.constant 0 : i32
    %c0_i32_1 = arith.constant 0 : i32
    return %c0_i32, %c0_i32_0 : i32, i32
  }
  func.func @transform_2(%arg0: i32, %arg1: i32) -> (i32, i32) {
    %c0_i32 = arith.constant 0 : i32
    %c0_i32_0 = arith.constant 0 : i32
    %c0_i32_1 = arith.constant 0 : i32
    return %c0_i32, %c0_i32_0 : i32, i32
  }
  func.func @transform_3(%arg0: i32, %arg1: i32) -> (i32, i32) {
    %c0_i32 = arith.constant 0 : i32
    %c0_i32_0 = arith.constant 0 : i32
    %c0_i32_1 = arith.constant 0 : i32
    return %c0_i32, %c0_i32_0 : i32, i32
  }
  func.func @transform_4(%arg0: i32, %arg1: i32) -> (i32, i32) {
    %c0_i32 = arith.constant 0 : i32
    %c0_i32_0 = arith.constant 0 : i32
    %c0_i32_1 = arith.constant 0 : i32
    return %c0_i32, %c0_i32_0 : i32, i32
  }
  func.func @transform_5(%arg0: i32, %arg1: i32) -> (i32, i32) {
    %c0_i32 = arith.constant 0 : i32
    %c0_i32_0 = arith.constant 0 : i32
    %c0_i32_1 = arith.constant 0 : i32
    return %c0_i32, %c0_i32_0 : i32, i32
  }
  func.func @transform_6(%arg0: i32, %arg1: i32) -> (i32, i32) {
    %c0_i32 = arith.constant 0 : i32
    %c0_i32_0 = arith.constant 0 : i32
    %c0_i32_1 = arith.constant 0 : i32
    return %c0_i32, %c0_i32_0 : i32, i32
  }
  func.func @transform_7(%arg0: i32, %arg1: i32) -> (i32, i32) {
    %c0_i32 = arith.constant 0 : i32
    %c0_i32_0 = arith.constant 0 : i32
    %c0_i32_1 = arith.constant 0 : i32
    return %c0_i32, %c0_i32_0 : i32, i32
  }
  func.func @transform_8(%arg0: i32, %arg1: i32) -> (i32, i32) {
    %c0_i32 = arith.constant 0 : i32
    %c0_i32_0 = arith.constant 0 : i32
    %c0_i32_1 = arith.constant 0 : i32
    return %c0_i32, %c0_i32_0 : i32, i32
  }
  func.func @transform_9(%arg0: i32, %arg1: i32) -> (i32, i32, i32, i32) {
    %c0_i32 = arith.constant 0 : i32
    %c0_i32_0 = arith.constant 0 : i32
    %c0_i32_1 = arith.constant 0 : i32
    return %arg0, %c0_i32, %arg1, %c0_i32_0 : i32, i32, i32, i32
  }
  func.func @transform_10(%arg0: i32, %arg1: i32) -> (i32, i32, i32, i32) {
    %c0_i32 = arith.constant 0 : i32
    %c0_i32_0 = arith.constant 0 : i32
    %c0_i32_1 = arith.constant 0 : i32
    return %arg0, %c0_i32, %arg1, %c0_i32_0 : i32, i32, i32, i32
  }
  func.func @transform_11(%arg0: i32, %arg1: i32) -> (i32, i32, i32, i32) {
    %c0_i32 = arith.constant 0 : i32
    %c0_i32_0 = arith.constant 0 : i32
    %c0_i32_1 = arith.constant 0 : i32
    return %arg0, %c0_i32, %arg1, %c0_i32_0 : i32, i32, i32, i32
  }
}

</mosaic_0001>

<bundles_post_ra>
// kernel: tpu_custom_call.1
= control target key start
LH: loop header
LB: loop body
LE: loop exit
PB: predicated region body
PF: predicated region fallthrough
CT: control target
= control target key end

     0   :  { %s2434_s0 = inlined_call_operand.hbm [shape: f32[2,8,32], index: 0, kind: input, shape index: {}]   ;;  %s2435_s1 = inlined_call_operand.vmem [shape: f32[1,32], index: 1, kind: input, shape index: {}]   ;;  %s2436_s2 = inlined_call_operand.vmem [shape: f32[1,32], index: 2, kind: input, shape index: {}]   ;;  %s2437_s3 = inlined_call_operand.hbm [shape: bf16[32,32], index: 3, kind: input, shape index: {}]   ;;  %s2438_s4 = inlined_call_operand.hbm [shape: f32[1,32], index: 4, kind: input, shape index: {}]   ;;  %s2439_s5 = inlined_call_operand.vmem [shape: bf16[32,32], index: 5, kind: input, shape index: {}]   ;;  %s2440_s6 = inlined_call_operand.vmem [shape: f32[1,32], index: 6, kind: input, shape index: {}]   ;;  %s2441_s7 = inlined_call_operand.hbm [shape: bf16[32,32], index: 7, kind: input, shape index: {}]   ;;  %s2442_s8 = inlined_call_operand.vmem [shape: f32[1,32], index: 8, kind: input, shape index: {}]   ;;  %s2443_s9 = inlined_call_operand.hbm [shape: bf16[2,4,8,8], index: 9, kind: output, shape index: {0}]   ;;  %s2444_s10 = inlined_call_operand.hbm [shape: bf16[2,4,8,8], index: 10, kind: output, shape index: {1}]   ;;  %s2445_s11 = inlined_call_operand.hbm [shape: bf16[2,4,8,8], index: 11, kind: output, shape index: {2}]  }
   0x1   :  { %2459 = sst [smem:[#allocation22_spill]] %s2434_s0 }
   0x2   :  { %2460 = sst [smem:[#allocation23_spill]] %s2442_s8 }
   0x3   :  { %2461 = sst [smem:[#allocation24_spill]] %s2443_s9 }
   0x4   :  { %2462 = sst [smem:[#allocation25_spill]] %s2444_s10 }
   0x5   :  { %2463 = sst [smem:[#allocation26_spill]] %s2445_s11 }
   0x6   :  { %17 = vsyncpa [#allocation3], 0 }
   0x7   :  { %19 = vsyncpa [#allocation3 + $0x1], 0 }
   0x8   :  { %20 = vsyncpa [#allocation6], 0 }
   0x9   :  { %21 = vsyncpa [#allocation9], 0 }
   0xa   :  { %22 = vsyncpa [#allocation4], 0 }
   0xb   :  { %24 = vsyncpa [#allocation4 + $0x1], 0 }
   0xc   :  { %25 = vsyncpa [#allocation12], 0 }
   0xd   :  { %27 = vsyncpa [#allocation12 + $0x1], 0  ;;  %s1959_s17 = smov 0   ;;  %s1961_s18 = smov 0  }
   0xe   :  { %s1963_s19 = smov 0   ;;  %s1965_s20 = smov 0  }
   0xf   :  { %s1967_s21 = smov 0   ;;  %s1969_s22 = smov 0  }
  0x10 LB: > { %2464 = sst [smem:[#allocation19_spill]] %s1859_s17  ;;  %s1990_s23 = sadd.s32 4294967295, %s1879_s22   ;;  %s1879_s22 = sphi %s1969_s22, %s33_s22   ;;  %s1875_s21 = sphi %s1967_s21, %s2499_s21   ;;  %s1871_s20 = sphi %s1965_s20, %s2498_s20   ;;  %s1867_s19 = sphi %s1963_s19, %s2497_s19   ;;  %s1863_s18 = sphi %s1961_s18, %s2496_s18   ;;  %s1859_s17 = sphi %s1959_s17, %s2495_s17  }
  0x11   : > { %2465 = sst [smem:[#allocation20_spill]] %s1871_s20  ;;  %s2446_s24 = sadd.s32 4294967294, %s1879_s22  }
  0x12   : > { %p67_p0 = scmp.ne.s32.totalorder %s1863_s18, %s1859_s17  ;;  %p2450_p1 = scmp.eq.s32.totalorder %s1990_s23, 0 }
  0x13   : > { %p267_p3 = scmp.eq.s32.totalorder %s2446_s24, 1  ;;  %p1411_p5 = scmp.ge.s32.totalorder %s1879_s22, 1 }
  0x14   : > { %p2001_p4 = por %p2450_p1, %p67_p0  ;;  %p330_p7 = scmp.lt.s32.totalorder %s1879_s22, 3 }
  0x15   : > { %p2006_p6 = por %p267_p3, %p67_p0  ;;  %s1881_s28 = smov [#allocation5]  }
  0x16   : > { %s2466_s25 = scalar_select %p2001_p4, 1, 0 }
  0x17   : > { %s2467_s26 = scalar_select %p2006_p6, 1, 0 }
  0x18   : > { %p2011_p8 = pnand %p1411_p5, %p330_p7  ;;  %s348_s29 = sshll.u32 %s1881_s28, 4  ;;  %s2015_s29 = int_to_ptr.vmem [resolvable:$true] %s348_s29 }
  0x19   : > { %2468 = sst [smem:[#allocation21_spill]] %s2467_s26  ;;  %s1882_s12 = smov [#allocation7]  }
  0x1a   : > { %s2469_s27 = scalar_select %p2011_p8, 1, 0 }
  0x1b   : > { %p1513_p9 = pneg %p2011_p8  ;;  %s362_s13 = sshll.u32 %s1882_s12, 4  ;;  %s2026_s13 = int_to_ptr.vmem [resolvable:$true] %s362_s13 }
  0x1c   : > { %s1883_s14 = smov [#allocation8]   ;;  %s1615_s24 = scalar_lea.hbm %s2437_s3, 256 }
  0x1d   : > { %p2022_p11 = pnand %p1513_p9, %p2450_p1  ;;  %s2028_s15 = sshll.u32 %s1883_s14, 4  ;;  %s379_s15 = int_to_ptr.vmem [resolvable:$true] %s2028_s15 }
  0x1e   : > { %p1616_p12 = scmp.ne.s32.totalorder %s2437_s3, %s1615_s24  ;;  %p1622_p5 = scmp.lt.u32.totalorder %s1615_s24, %s2437_s3 }
  0x1f   : > { %p2038_p13 = pneg %p2022_p11 }
  0x21   : > { %p1618_p0 = pnand %p2038_p13, %p1616_p12 }
  0x23   : > { %p1619_p3 = pneg %p1618_p0 }
  0x25   : > { %p1624_p7 = pnand %p1622_p5, %p1619_p3 }
  0x27   : > { %1627 = shalt.err (!%p1624_p7)
}
  0x28   : > { %s1628_s17 = scalar_lea.vmem %s2015_s29, 256  ;;  %p1636_p2 = scmp.lt.s32.totalorder %s2015_s29, %s2015_s29 }
  0x29   : > { %p1629_p9 = scmp.ne.s32.totalorder %s2015_s29, %s1628_s17  ;;  %p1637_p6 = scmp.lt.s32.totalorder %s1628_s17, %s1628_s17 }
  0x2b   : > { %p1631_p10 = pnand %p1629_p9, %p2038_p13  ;;  %p1638_p12 = por %p1637_p6, %p1636_p2 }
  0x2d   : > { %p1632_p1 = pneg %p1631_p10 }
  0x2f   : > { %p1639_p0 = pnand %p1638_p12, %p1632_p1 }
  0x31   : > { %1642 = shalt.err (!%p1639_p0)
}
  0x32   : > { %s1884_s26 = smov 64   ;;  %s1885_s24 = smov 4  }
  0x33   : > { %1516 = dma.hbm_to_vmem [thread:$0]  (!%p2022_p11), %s2437_s3, 256, %s2015_s29, [#allocation6], %s1884_s26, %s1884_s26, %s1885_s24  }
  0x34   : > { %s1643_s17 = scalar_lea.hbm %s2438_s4, 16 }
  0x35   : > { %p1644_p1 = scmp.ne.s32.totalorder %s2438_s4, %s1643_s17  ;;  %p1650_p10 = scmp.lt.u32.totalorder %s1643_s17, %s2438_s4 }
  0x37   : > { %p1646_p2 = pnand %p1644_p1, %p2038_p13 }
  0x39   : > { %p1647_p6 = pneg %p1646_p2 }
  0x3b   : > { %p1652_p3 = pnand %p1650_p10, %p1647_p6 }
  0x3d   : > { %1655 = shalt.err (!%p1652_p3)
}
  0x3e   : > { %s1656_s29 = scalar_lea.vmem %s2026_s13, 16  ;;  %s1663_s9 = scalar_lea.vmem %s2026_s13, 32 }
  0x3f   : > { %p1657_p5 = scmp.ne.s32.totalorder %s2026_s13, %s1656_s29  ;;  %p1664_p12 = scmp.lt.s32.totalorder %s2026_s13, %s2026_s13 }
  0x40   : > { %p1665_p0 = scmp.lt.s32.totalorder %s1663_s9, %s1656_s29 }
  0x41   : > { %p1659_p7 = pnand %p1657_p5, %p2038_p13 }
  0x42   : > { %p1666_p1 = por %p1665_p0, %p1664_p12 }
  0x43   : > { %p1660_p9 = pneg %p1659_p7 }
  0x45   : > { %p1667_p2 = pnand %p1666_p1, %p1660_p9 }
  0x47   : > { %1670 = shalt.err (!%p1667_p2)
}
  0x48   : > { %1519 = dma.hbm_to_vmem [thread:$0]  (!%p2022_p11), %s2438_s4, 16, %s2026_s13, [#allocation6]  }
  0x49   : > { %s1671_s28 = scalar_lea.hbm %s2441_s7, 256 }
  0x4a   : > { %p1672_p6 = scmp.ne.s32.totalorder %s2441_s7, %s1671_s28  ;;  %p1678_p5 = scmp.lt.u32.totalorder %s1671_s28, %s2441_s7 }
  0x4c   : > { %p1674_p10 = pnand %p1672_p6, %p2038_p13 }
  0x4e   : > { %p1675_p3 = pneg %p1674_p10 }
  0x50   : > { %p1680_p7 = pnand %p1678_p5, %p1675_p3 }
  0x52   : > { %1683 = shalt.err (!%p1680_p7)
}
  0x53   : > { %s1684_s9 = scalar_lea.vmem %s379_s15, 256  ;;  %p1692_p1 = scmp.lt.s32.totalorder %s379_s15, %s379_s15 }
  0x54   : > { %p1685_p9 = scmp.ne.s32.totalorder %s379_s15, %s1684_s9  ;;  %p1693_p2 = scmp.lt.s32.totalorder %s1684_s9, %s1684_s9 }
  0x56   : > { %p1687_p12 = pnand %p1685_p9, %p2038_p13  ;;  %p1694_p4 = por %p1693_p2, %p1692_p1 }
  0x58   : > { %p1688_p0 = pneg %p1687_p12 }
  0x5a   : > { %p1695_p8 = pnand %p1694_p4, %p1688_p0 }
  0x5c   : > { %1698 = shalt.err (!%p1695_p8)
}
  0x5d   : > { %1522 = dma.hbm_to_vmem [thread:$0]  (!%p2022_p11), %s2441_s7, 256, %s379_s15, [#allocation9], %s1884_s26, %s1884_s26, %s1885_s24  }
  0x5e   : > { %s54_s11 = sadd.s32 1, %s1867_s19  ;;  %s45_s30 = sadd.s32 1, %s1875_s21 }
  0x5f   : > { %p61_p4 = scmp.ne.s32.totalorder %s1867_s19, %s1863_s18  ;;  %p47_p8 = scmp.ge.s32.totalorder %s45_s30, 2 }
  0x60   : > { %p62_p13 = scmp.eq.s32.totalorder %s1879_s22, 0  ;;  %p2472_p6 = scmp.eq.s32.totalorder %s1990_s23, 1 }
  0x61   : > { %p1540_p3 = scmp.lt.s32.totalorder %s1879_s22, 2  ;;  %s2501_s30 = smov (%p47_p8, %s45_s30), 0 }
  0x62   : > { %p2115_p10 = por %p2472_p6, %p61_p4  ;;  %p63_p5 = por %p62_p13, %p61_p4 }
  0x63   : > { %s395_s20 = sand.u32 1, %s1867_s19   ;;  %s49_s16 = ssub.s32 %s1875_s21, %s2501_s30 }
  0x64   : > { %p52_p7 = scmp.eq.s32.totalorder %s49_s16, 0  ;;  %s1416_s15 = sshll.u32 %s395_s20, 3 }
  0x65   : > { %s1417_s26 = sshll.u32 %s1875_s21, 7  ;;  %s2474_s0 = sld [smem:[#allocation22_spill]] }
  0x66   : > { %s2127_s24 = scalar_select %p52_p7, %s1867_s19, %s54_s11  }
  0x67   : > { %s399_s17 = scalar_lea.vmem [#allocation2], %s1416_s15  ;;  %p2138_p11 = pnand %p1540_p3, %p63_p5 }
  0x68   : > { %s407_s29 = sshll.u32 %s399_s17, 4  ;;  %s396_s13 = scalar_lea.sflag [#allocation3], %s395_s20  ;;  %s2134_s29 = int_to_ptr.vmem [resolvable:$true] %s407_s29 }
  0x69   : > { %p1701_p12 = pneg %p2138_p11 }
  0x6b   : > { %s2132_s14 = scalar_lea.hbm %s2474_s0, %s1417_s26  ;;  %s1704_s15 = scalar_lea.hbm %s2474_s0, 256 }
  0x6c   : > { %s1699_s8 = scalar_lea.hbm %s2132_s14, 128  ;;  %p1705_p2 = scmp.lt.u32.totalorder %s2132_s14, %s2474_s0 }
  0x6d   : > { %p1700_p9 = scmp.ne.s32.totalorder %s2132_s14, %s1699_s8  ;;  %p1706_p4 = scmp.lt.u32.totalorder %s1704_s15, %s1699_s8 }
  0x6e   : > { %p1708_p13 = scmp.lt.u32.totalorder %s1699_s8, %s2132_s14 }
  0x6f   : > { %p1702_p0 = pnand %p1701_p12, %p1700_p9  ;;  %p1707_p8 = por %p1706_p4, %p1705_p2 }
  0x71   : > { %p1703_p1 = pneg %p1702_p0  ;;  %p1709_p6 = por %p1708_p13, %p1707_p8 }
  0x73   : > { %p1710_p3 = pnand %p1709_p6, %p1703_p1 }
  0x75   : > { %1713 = shalt.err (!%p1710_p3)
}
  0x76   : > { %s1714_s20 = scalar_lea.vmem %s2134_s29, 128  ;;  %s1886_s12 = smov [#allocation2]  }
  0x77   : > { %p1715_p5 = scmp.ne.s32.totalorder %s2134_s29, %s1714_s20  ;;  %s1719_s17 = sshll.u32 %s1886_s12, 4  ;;  %s1720_s17 = int_to_ptr.vmem [resolvable:$false] %s1719_s17 }
  0x78   : > { %s1721_s11 = scalar_lea.vmem %s1720_s17, 256  ;;  %p1722_p0 = scmp.lt.s32.totalorder %s2134_s29, %s1720_s17 }
  0x79   : > { %p1717_p7 = pnand %p1715_p5, %p1701_p12  ;;  %p1723_p2 = scmp.lt.s32.totalorder %s1721_s11, %s1714_s20 }
  0x7b   : > { %p1718_p9 = pneg %p1717_p7  ;;  %p1724_p4 = por %p1723_p2, %p1722_p0 }
  0x7d   : > { %p1725_p8 = pnand %p1724_p4, %p1718_p9 }
  0x7f   : > { %1728 = shalt.err (!%p1725_p8)
}
  0x80   : > { %1526 = dma.hbm_to_vmem [thread:$0]  (!%p2138_p11), %s2132_s14, 128, %s2134_s29, %s396_s13  }
  0x81   : > { %p2476_p1 = scmp.ne.s32.totalorder %s2469_s27, 0 }
  0x82   : > { %s2170_s8 = sand.u32 (!%p2476_p1), 1, %s1863_s18   ;;  %p2477_p12 = scmp.ne.s32.totalorder (!%p2476_p1), %s2466_s25, 0 }
  0x83   : > { %416 = sbr.rel (%p2476_p1) target bundleno = 888 (0x378), region = 56  ;;  %s1419_s16 = sshll.u32 (!%p2476_p1), %s2170_s8, 3 }
  0x84   : > { %s419_s15 = scalar_lea.sflag (!%p2476_p1), [#allocation3], %s2170_s8  ;;  %s422_s26 = scalar_lea.vmem (!%p2476_p1), [#allocation2], %s1419_s16 }
  0x8a   : > { %1838 = dma.done.wait (%p2477_p12), %s419_s15, 128  }
  0x8b   : > { %1840 = vsyncadd (%p2477_p12), %s419_s15, 4294967168  ;;  %p2478_p13 = scmp.eq.s32.totalorder %s1990_s23, 0 }
  0x8d   : > { %1842 = dma.done.wait (%p2478_p13), [#allocation6], 272   ;;  %p2479_p11 = pmov %p2478_p13 }
  0x8f   : > { %1844 = vsyncadd (%p2479_p11), [#allocation6], 4294967024  ;;  %p2480_p6 = pmov %p2479_p11 }
  0x91   : > { %1846 = dma.done.wait (%p2480_p6), [#allocation9], 256   ;;  %p2481_p3 = pmov %p2480_p6 }
  0x92   : > { %vm487_vm0 = vcmask 261120   ;;  %v484_v0 = vld [vmem:[%s422_s26] sm:$0xff]  ;;  %v1607_v7 = vld [vmem:[#allocation5] sm:$0xff]   ;;  %v1887_v9 = vmov 0.0   ;;  %v1609_v10 = vld [vmem:[#allocation5 + $0x8] sm:$0xff]   ;;  %vm1888_vm1 = vmmov 0   ;;  %v598_v44 = vlaneseq }
  0x93   : > { %1848 = vsyncadd (%p2481_p3), [#allocation9], 4294967040  ;;  %v488_v1 = vsel %vm487_vm0, %v484_v0, 0.0  ;;  %v1608_v8 = vld [vmem:[%s2439_s5] sm:$0xff]   ;;  %1469 = vmatprep.subr.bf16.mxu0 %v1887_v9  ;;  %1477 = vmatprep.subr.bf16.mxu1 %v1887_v9  ;;  %v1610_v11 = vld [vmem:[%s2439_s5 + $0x8] sm:$0xff]   ;;  %s1889_s11 = smov 104  }
  0x94   : > { %489 = vadd.xlane.f32.xlu0 %v488_v1  ;;  %1470 = vmatpush3.bf16.msra.mxu0 %v1607_v7  ;;  %v1426_v16 = vld [vmem:[%s2435_s1] ss:$0 sm:$0xff]  ;;  %v1611_v21 = vld [vmem:[#allocation8] sm:$0xff]   ;;  %v1612_v23 = vld [vmem:[#allocation8 + $0x8] sm:$0xff]   ;;  %s1890_s16 = smov 120   ;;  %s1891_s15 = smov 112  }
  0x95   : > { %1478 = vmatpush3.bf16.msra.mxu1 %v1608_v8  ;;  %1471 = vmatprep.subr.bf16.mxu0 %v1887_v9  ;;  %v1427_v18 = vld [vmem:[%s2436_s2] ss:$0 sm:$0xff]  ;;  %s2482_s27 = sld [smem:[#allocation23_spill]]  ;;  %v1892_v42 = vmov 1983009808   ;;  %v599_v48 = vshrl.u32 %v598_v44, 7 }
  0x96   : > { %1479 = vmatprep.subr.bf16.mxu1 %v1887_v9  ;;  %1473 = vmatprep.mubr.msk.bf16.mxu0 %vm1888_vm1, %v1887_v9  ;;  %v1434_v24 = vld [vmem:[%s2440_s6] ss:$0 sm:$0xff]  ;;  %v596_v43 = vunpack.c.l.s4 %v1892_v42  ;;  %v1893_v45 = vmov 1934713408   ;;  %s2241_s14 = sshll.u32 %s2170_s8, 4  ;;  %s2483_s29 = sld [smem:[#allocation20_spill]] }
  0x97   : > { %1481 = vmatprep.mubr.msk.bf16.mxu1 %vm1888_vm1, %v1887_v9  ;;  %v1428_v34 = vld [vmem:[#allocation7] ss:$0 sm:$0xff]  ;;  %v628_v46 = vunpack.c.l.s4 %v1893_v45  ;;  %vm733_vm2 = vcmask 60416   ;;  %s1177_s9 = sand.u32 1, %s1990_s23   ;;  %s475_s28 = scalar_lea.vmem [#allocation11], %s2241_s14 }
  0x98   : > { %1472 = vmatpush3.bf16.msra.mxu0 %v1609_v10  ;;  %v597_v47 = vunpack.c.0.s8 %v596_v43  ;;  %s1214_s20 = sshll.u32 %s475_s28, 4  ;;  %s1894_s25 = smov [#allocation11]   ;;  %s2264_s20 = int_to_ptr.vmem [resolvable:$true] %s1214_s20 }
  0x99   : > { %1480 = vmatpush3.bf16.msra.mxu1 %v1610_v11  ;;  %1485 = vmatprep.subr.bf16.mxu0 %v1887_v9  ;;  %v629_v51 = vunpack.c.0.s8 %v628_v46  ;;  %s1729_s26 = scalar_lea.vmem %s2264_s20, 256 }
  0x9a   : > { %v2222_v52 = vsub.s32 %v597_v47, %v599_v48  ;;  %p1730_p5 = scmp.ne.s32.totalorder %s2264_s20, %s1729_s26 }
  0x9b   : > { %v1440_v40 = vld [vmem:[%s2482_s27] ss:$0 sm:$0xff]  ;;  %v2224_v58 = vsub.s32 %v629_v51, %v599_v48  ;;  %s1733_s27 = sshll.u32 %s1894_s25, 4  ;;  %s1734_s27 = int_to_ptr.vmem [resolvable:$false] %s1733_s27 }
  0x9c   : > { %s2255_s13 = sshll.u32 %s2483_s29, 8  ;;  %p1731_p7 = pnand %p1730_p5, %p2115_p10 }
  0x9d   : > { %s1735_s29 = scalar_lea.vmem %s1734_s27, 512  ;;  %p1736_p0 = scmp.lt.s32.totalorder %s2264_s20, %s1734_s27 }
  0x9e   : > { %p1732_p9 = pneg %p1731_p7  ;;  %p1737_p2 = scmp.lt.s32.totalorder %s1735_s29, %s1729_s26 }
  0xa0   : > { %p1738_p4 = por %p1737_p2, %p1736_p0 }
  0xa2   : > { %p1739_p8 = pnand %p1738_p4, %p1732_p9 }
 0x121   : > { %v490_v2 = vpop.xlane.xlu0 %489 }
 0x122   : > { %v492_v3 = vmul.f32 0.03125, %v490_v2 }
 0x124   : > { %v493_v4 = vsub.f32 %v484_v0, %v492_v3 }
 0x126   : > { %v494_v5 = vmul.f32 %v493_v4, %v493_v4 }
 0x128   : > { %v495_v6 = vsel %vm487_vm0, %v494_v5, 0.0 }
 0x129   : > { %496 = vadd.xlane.f32.xlu0 %v495_v6 }
 0x1b6   : > { %v497_v12 = vpop.xlane.xlu0 %496 }
 0x1b7   : > { %v498_v13 = vmul.f32 0.03125, %v497_v12 }
 0x1b9   : > { %v499_v14 = vadd.f32 1e-05, %v498_v13 }
 0x1bb   : > { %1613 = vrsqrt.f32 %v499_v14 }
 0x1c5   : > { %v1614_v15 = vpop.eup %1613 }
 0x1c6   : > { %v501_v17 = vmul.f32 %v1614_v15, %v493_v4 }
 0x1c8   : > { %v508_v19 = vmul.f32 %v1426_v16, %v501_v17 }
 0x1ca   : > { %v515_v20 = vadd.f32 %v1427_v18, %v508_v19 }
 0x1cc   : > { %v516_v22 = vpack.c.bf16 %v515_v20, %v515_v20 }
 0x1ce   : > { %1474 = vmatmul.mubr.msk.bf16.vlgmr.msra.gmra.mrb[0].mxu0 %vm487_vm0, %v516_v22  ;;  %1482 = vmatmul.mubr.msk.bf16.vlgmr.msra.gmra.mrb[0].mxu1 %vm487_vm0, %v516_v22 }
 0x1cf   : > { %1486 = vmatpush3.bf16.msra.mxu0 %v1611_v21  ;;  %1489 = vmatprep.mubr.msk.bf16.mxu0 %vm1888_vm1, %v1887_v9 }
 0x1d0   : > { %1487 = vmatprep.subr.bf16.mxu0 %v1887_v9 }
 0x1d3   : > { %1488 = vmatpush3.bf16.msra.mxu0 %v1612_v23 }
 0x1d6   : > { %1490 = vmatmul.mubr.msk.bf16.vlgmr.msra.gmra.mrb[4].mxu0 %vm487_vm0, %v516_v22 }
 0x2a1   : > { %v577_v25 = vpop.f32.mrb[0].mxu0  ;;  %v795_v26 = vpop.f32.mrb[0].mxu1 }
 0x2a2   : > { %v796_v27 = vadd.f32 %v1434_v24, %v795_v26  ;;  %v1475_v28 = vpop.f32.mrb[1].mxu0  ;;  %v1483_v29 = vpop.f32.mrb[1].mxu1  ;;  %v2209_v36 = vadd.f32 %v1428_v34, %v577_v25 }
 0x2a3   : > { %v580_v30 = vpop.f32.mrb[2].mxu0  ;;  %v798_v31 = vpop.f32.mrb[2].mxu1 }
 0x2a4   : > { %808 = vrot.lane.b32.xlu0 %v796_v27, %s1889_s11  ;;  %802 = vrot.lane.b32.xlu1 %v796_v27, %s1890_s16  ;;  %v1476_v32 = vpop.f32.mrb[3].mxu0  ;;  %v1484_v33 = vpop.f32.mrb[3].mxu1 }
 0x2a8   : > { %805 = vrot.lane.b32.xlu1 %v796_v27, %s1891_s15 }
 0x2a9   : > { %v1012_v35 = vpop.f32.mrb[4].mxu0 }
 0x2aa   : > { %v1491_v37 = vpop.f32.mrb[5].mxu0  ;;  %v2217_v41 = vadd.f32 %v1440_v40, %v1012_v35 }
 0x2ab   : > { %v1015_v38 = vpop.f32.mrb[6].mxu0 }
 0x2ac   : > { %584 = vrot.lane.b32.xlu1 %v2209_v36, %s1890_s16  ;;  %v1492_v39 = vpop.f32.mrb[7].mxu0 }
 0x2b0   : > { %587 = vrot.lane.b32.xlu1 %v2209_v36, %s1891_s15 }
 0x2b4   : > { %590 = vrot.lane.b32.xlu1 %v2209_v36, %s1889_s11 }
 0x2b8   : > { %1019 = vrot.lane.b32.xlu1 %v2217_v41, %s1890_s16 }
 0x2bc   : > { %1022 = vrot.lane.b32.xlu1 %v2217_v41, %s1891_s15  ;;  %s2276_s15 = scalar_lea.sflag [#allocation12], %s1177_s9 }
 0x2c0   : > { %1025 = vrot.lane.b32.xlu1 %v2217_v41, %s1889_s11  ;;  %s2484_s11 = sld [smem:[#allocation25_spill]] }
 0x2c6   : > { %s2262_s16 = scalar_lea.hbm %s2484_s11, %s2255_s13 }
 0x316   : > { %v809_v49 = vpop.permute.xlu0 %808  ;;  %v803_v50 = vpop.permute.xlu1 %802 }
 0x317   : > { %v827_v53 = vcombine.low %v803_v50, %v809_v49  ;;  %v828_v54 = vcombine.high %v803_v50, %v809_v49 }
 0x319   : > { %v835_v59 = vrot.slane %v827_v53, %v2222_v52  ;;  %v842_v60 = vrot.slane %v828_v54, %v2222_v52 }
 0x31a   : > { %v806_v55 = vpop.permute.xlu1 %805 }
 0x31b   : > { %v811_v56 = vcombine.low %v796_v27, %v806_v55  ;;  %v812_v57 = vcombine.high %v796_v27, %v806_v55 }
 0x31d   : > { %v819_v61 = vrot.slane %v811_v56, %v2222_v52  ;;  %v826_v62 = vrot.slane %v812_v57, %v2222_v52 }
 0x31e   : > { %v585_v63 = vpop.permute.xlu1 %584 }
 0x31f   : > { %v843_v0 = vcombine.low %v819_v61, %v835_v59  ;;  %v844_v1 = vcombine.high %v819_v61, %v835_v59  ;;  %v859_v2 = vcombine.low %v826_v62, %v842_v60  ;;  %v860_v3 = vcombine.high %v826_v62, %v842_v60 }
 0x321   : > { %v851_v4 = vrot.slane %v843_v0, %v2224_v58  ;;  %v858_v5 = vrot.slane %v844_v1, %v2224_v58  ;;  %v867_v6 = vrot.slane %v859_v2, %v2224_v58  ;;  %v874_v7 = vrot.slane %v860_v3, %v2224_v58 }
 0x322   : > { %v588_v8 = vpop.permute.xlu1 %587 }
 0x323   : > { %v879_v9 = vcombine.low %v851_v4, %v858_v5  ;;  %v1438_v10 = vcombine.high %v851_v4, %v858_v5  ;;  %v895_v11 = vcombine.low %v867_v6, %v874_v7  ;;  %v1439_v12 = vcombine.high %v867_v6, %v874_v7 }
 0x324   : > { %v593_v17 = vcombine.low %v2209_v36, %v588_v8  ;;  %v594_v18 = vcombine.high %v2209_v36, %v588_v8 }
 0x325   : > { %v886_v13 = vrot.slane %v879_v9, %v2222_v52  ;;  %v894_v14 = vrot.slane %v1438_v10, %v2222_v52  ;;  %v902_v15 = vrot.slane %v895_v11, %v2222_v52  ;;  %v910_v16 = vrot.slane %v1439_v12, %v2222_v52 }
 0x326   : > { %v591_v19 = vpop.permute.xlu1 %590  ;;  %v601_v30 = vrot.slane %v593_v17, %v2222_v52  ;;  %v608_v31 = vrot.slane %v594_v18, %v2222_v52 }
 0x327   : > { %v911_v20 = vcombine.low %v886_v13, %v894_v14  ;;  %v912_v21 = vcombine.high %v886_v13, %v894_v14  ;;  %v927_v22 = vcombine.low %v902_v15, %v910_v16  ;;  %v928_v23 = vcombine.high %v902_v15, %v910_v16 }
 0x328   : > { %v609_v24 = vcombine.low %v585_v63, %v591_v19  ;;  %v610_v25 = vcombine.high %v585_v63, %v591_v19 }
 0x329   : > { %v919_v26 = vrot.slane %v911_v20, %v2224_v58  ;;  %v926_v27 = vrot.slane %v912_v21, %v2224_v58  ;;  %v935_v28 = vrot.slane %v927_v22, %v2224_v58  ;;  %v942_v29 = vrot.slane %v928_v23, %v2224_v58 }
 0x32a   : > { %v617_v32 = vrot.slane %v609_v24, %v2222_v52  ;;  %v624_v33 = vrot.slane %v610_v25, %v2222_v52  ;;  %v2252_v34 = vpop.permute.xlu1 %1019 }
 0x32b   : > { %v943_v35 = vcombine.low %v919_v26, %v935_v28  ;;  %v944_v36 = vcombine.high %v919_v26, %v935_v28  ;;  %v945_v37 = vcombine.low %v926_v27, %v942_v29  ;;  %v946_v38 = vcombine.high %v926_v27, %v942_v29 }
 0x32c   : > { %v625_v39 = vcombine.low %v601_v30, %v617_v32  ;;  %v626_v40 = vcombine.high %v601_v30, %v617_v32  ;;  %v641_v42 = vcombine.low %v608_v31, %v624_v33  ;;  %v642_v43 = vcombine.high %v608_v31, %v624_v33 }
 0x32d   : > { %v947_v44 = vpack.c.bf16 %v943_v35, %v943_v35  ;;  %v948_v45 = vpack.c.bf16 %v944_v36, %v944_v36  ;;  %v949_v46 = vpack.c.bf16 %v945_v37, %v945_v37  ;;  %v950_v47 = vpack.c.bf16 %v946_v38, %v946_v38 }
 0x32e   : > { %v633_v48 = vrot.slane %v625_v39, %v2224_v58  ;;  %v640_v49 = vrot.slane %v626_v40, %v2224_v58  ;;  %v649_v50 = vrot.slane %v641_v42, %v2224_v58  ;;  %v656_v51 = vrot.slane %v642_v43, %v2224_v58  ;;  %v1023_v53 = vpop.permute.xlu1 %1022 }
 0x32f   : > { %951 = vst.msk [vmem:[%s475_s28] sm:$0xf] %vm733_vm2, %v947_v44  ;;  %952 = vst.msk [vmem:[%s475_s28 + $0x4] sm:$0xf] %vm733_vm2, %v948_v45 }
 0x330   : > { %953 = vst.msk [vmem:[%s475_s28 + $0x8] sm:$0xf] %vm733_vm2, %v949_v46  ;;  %954 = vst.msk [vmem:[%s475_s28 + $0xc] sm:$0xf] %vm733_vm2, %v950_v47  ;;  %v661_v54 = vcombine.low %v633_v48, %v640_v49  ;;  %v1432_v55 = vcombine.high %v633_v48, %v640_v49  ;;  %v677_v56 = vcombine.low %v649_v50, %v656_v51 }
 0x331   : > { %v1433_v57 = vcombine.high %v649_v50, %v656_v51 }
 0x332   : > { %1742 = shalt.err (!%p1739_p8)
}
 0x333   : > { %s1743_s23 = scalar_lea.hbm %s2262_s16, 256  ;;  %s1747_s12 = scalar_lea.hbm %s2484_s11, 512 }
 0x334   : > { %p1744_p1 = scmp.ne.s32.totalorder %s2262_s16, %s1743_s23  ;;  %p1748_p11 = scmp.lt.u32.totalorder %s2262_s16, %s2484_s11 }
 0x335   : > { %p1749_p6 = scmp.lt.u32.totalorder %s1747_s12, %s1743_s23  ;;  %p1751_p5 = scmp.lt.u32.totalorder %s1743_s23, %s2262_s16 }
 0x336   : > { %p1745_p12 = pnand %p1744_p1, %p2115_p10 }
 0x337   : > { %p1750_p3 = por %p1749_p6, %p1748_p11 }
 0x338   : > { %p1746_p13 = pneg %p1745_p12 }
 0x339   : > { %p1752_p7 = por %p1751_p5, %p1750_p3 }
 0x33b   : > { %p1753_p9 = pnand %p1752_p7, %p1746_p13 }
 0x33d   : > { %1756 = shalt.err (!%p1753_p9)
}
 0x33e   : > { %s2455_s26 = smov 64   ;;  %s2457_s27 = smov 4   ;;  %v1028_v59 = vcombine.low %v2217_v41, %v1023_v53  ;;  %v1029_v60 = vcombine.high %v2217_v41, %v1023_v53  ;;  %v668_v61 = vrot.slane %v661_v54, %v2222_v52  ;;  %v676_v62 = vrot.slane %v1432_v55, %v2222_v52  ;;  %v1026_v1 = vpop.permute.xlu1 %1025 }
 0x33f   : > { %1508 = dma.vmem_to_hbm [thread:$0]  (%p2115_p10), %s2264_s20, 256, %s2262_s16, %s2276_s15, %s2455_s26, %s2455_s26, %s2457_s27   ;;  %v684_v63 = vrot.slane %v677_v56, %v2222_v52  ;;  %v692_v0 = vrot.slane %v1433_v57, %v2222_v52  ;;  %v1044_v2 = vcombine.low %v2252_v34, %v1026_v1  ;;  %v1045_v3 = vcombine.high %v2252_v34, %v1026_v1 }
 0x340   : > { %v693_v4 = vcombine.low %v668_v61, %v676_v62  ;;  %v694_v5 = vcombine.high %v668_v61, %v676_v62  ;;  %v1036_v41 = vrot.slane %v1028_v59, %v2222_v52  ;;  %v1043_v8 = vrot.slane %v1029_v60, %v2222_v52  ;;  %s468_s20 = scalar_lea.vmem [#allocation10], %s2241_s14  ;;  %s2485_s9 = sld [smem:[#allocation24_spill]] }
 0x341   : > { %v709_v6 = vcombine.low %v684_v63, %v692_v0  ;;  %v710_v7 = vcombine.high %v684_v63, %v692_v0  ;;  %v1052_v9 = vrot.slane %v1044_v2, %v2222_v52  ;;  %v1059_v10 = vrot.slane %v1045_v3, %v2222_v52  ;;  %s1197_s16 = sshll.u32 %s468_s20, 4  ;;  %s1897_s25 = smov [#allocation10]   ;;  %s2330_s16 = int_to_ptr.vmem [resolvable:$true] %s1197_s16 }
 0x342   : > { %v701_v11 = vrot.slane %v693_v4, %v2224_v58  ;;  %v708_v12 = vrot.slane %v694_v5, %v2224_v58  ;;  %s1757_s17 = scalar_lea.vmem %s2330_s16, 256  ;;  %s1761_s29 = sshll.u32 %s1897_s25, 4  ;;  %s1762_s29 = int_to_ptr.vmem [resolvable:$false] %s1761_s29 }
 0x343   : > { %v717_v13 = vrot.slane %v709_v6, %v2224_v58  ;;  %v724_v14 = vrot.slane %v710_v7, %v2224_v58  ;;  %v1060_v15 = vcombine.low %v1036_v41, %v1052_v9  ;;  %v1061_v16 = vcombine.high %v1036_v41, %v1052_v9  ;;  %p1758_p0 = scmp.ne.s32.totalorder %s2330_s16, %s1757_s17  ;;  %s1763_s23 = scalar_lea.vmem %s1762_s29, 512 }
 0x344   : > { %v1076_v17 = vcombine.low %v1043_v8, %v1059_v10  ;;  %v1077_v18 = vcombine.high %v1043_v8, %v1059_v10  ;;  %p1764_p8 = scmp.lt.s32.totalorder %s2330_s16, %s1762_s29  ;;  %p1765_p1 = scmp.lt.s32.totalorder %s1763_s23, %s1757_s17 }
 0x345   : > { %v725_v19 = vcombine.low %v701_v11, %v717_v13  ;;  %v726_v20 = vcombine.high %v701_v11, %v717_v13  ;;  %v727_v21 = vcombine.low %v708_v12, %v724_v14  ;;  %v728_v22 = vcombine.high %v708_v12, %v724_v14  ;;  %p1759_p2 = pnand %p1758_p0, %p2115_p10 }
 0x346   : > { %v1068_v23 = vrot.slane %v1060_v15, %v2224_v58  ;;  %v1075_v24 = vrot.slane %v1061_v16, %v2224_v58  ;;  %v1084_v25 = vrot.slane %v1076_v17, %v2224_v58  ;;  %v1091_v26 = vrot.slane %v1077_v18, %v2224_v58  ;;  %s2328_s28 = scalar_lea.hbm %s2485_s9, %s2255_s13  ;;  %p1766_p12 = por %p1765_p1, %p1764_p8 }
 0x347   : > { %v729_v27 = vpack.c.bf16 %v725_v19, %v725_v19  ;;  %v730_v28 = vpack.c.bf16 %v726_v20, %v726_v20  ;;  %v731_v29 = vpack.c.bf16 %v727_v21, %v727_v21  ;;  %v732_v30 = vpack.c.bf16 %v728_v22, %v728_v22  ;;  %p1760_p4 = pneg %p1759_p2 }
 0x348   : > { %v1096_v31 = vcombine.low %v1068_v23, %v1075_v24  ;;  %v1444_v32 = vcombine.high %v1068_v23, %v1075_v24  ;;  %v1112_v33 = vcombine.low %v1084_v25, %v1091_v26  ;;  %v1445_v34 = vcombine.high %v1084_v25, %v1091_v26 }
 0x349   : > { %734 = vst.msk [vmem:[%s468_s20] sm:$0xf] %vm733_vm2, %v729_v27  ;;  %735 = vst.msk [vmem:[%s468_s20 + $0x4] sm:$0xf] %vm733_vm2, %v730_v28  ;;  %p1767_p13 = pnand %p1766_p12, %p1760_p4 }
 0x34a   : > { %736 = vst.msk [vmem:[%s468_s20 + $0x8] sm:$0xf] %vm733_vm2, %v731_v29  ;;  %737 = vst.msk [vmem:[%s468_s20 + $0xc] sm:$0xf] %vm733_vm2, %v732_v30  ;;  %v1103_v35 = vrot.slane %v1096_v31, %v2222_v52  ;;  %v1111_v36 = vrot.slane %v1444_v32, %v2222_v52  ;;  %v1119_v37 = vrot.slane %v1112_v33, %v2222_v52 }
 0x34b   : > { %v1127_v38 = vrot.slane %v1445_v34, %v2222_v52 }
 0x34c   : > { %1770 = shalt.err (!%p1767_p13)
}
 0x34d   : > { %s1771_s20 = scalar_lea.hbm %s2328_s28, 256  ;;  %s1775_s25 = scalar_lea.hbm %s2485_s9, 512 }
 0x34e   : > { %p1772_p11 = scmp.ne.s32.totalorder %s2328_s28, %s1771_s20  ;;  %p1776_p5 = scmp.lt.u32.totalorder %s2328_s28, %s2485_s9 }
 0x34f   : > { %p1777_p7 = scmp.lt.u32.totalorder %s1775_s25, %s1771_s20  ;;  %p1779_p0 = scmp.lt.u32.totalorder %s1771_s20, %s2328_s28 }
 0x350   : > { %p1773_p6 = pnand %p1772_p11, %p2115_p10 }
 0x351   : > { %p1778_p9 = por %p1777_p7, %p1776_p5 }
 0x352   : > { %p1774_p3 = pneg %p1773_p6 }
 0x353   : > { %p1780_p2 = por %p1779_p0, %p1778_p9 }
 0x355   : > { %p1781_p4 = pnand %p1780_p2, %p1774_p3 }
 0x357   : > { %1784 = shalt.err (!%p1781_p4)
}
 0x358   : > { %s2486_s17 = smov 4   ;;  %s2487_s23 = smov 64   ;;  %v1128_v52 = vcombine.low %v1103_v35, %v1111_v36  ;;  %v1129_v39 = vcombine.high %v1103_v35, %v1111_v36  ;;  %v1144_v40 = vcombine.low %v1119_v37, %v1127_v38  ;;  %v1145_v42 = vcombine.high %v1119_v37, %v1127_v38 }
 0x359   : > { %s2488_s0 = scalar_lea.sflag [#allocation4], %s2170_s8  ;;  %s482_s26 = scalar_lea.vmem [#allocation13], %s2241_s14 }
 0x35a   : > { %1507 = dma.vmem_to_hbm [thread:$0]  (%p2115_p10), %s2330_s16, 256, %s2328_s28, %s2488_s0, %s2487_s23, %s2487_s23, %s2486_s17   ;;  %v1136_v43 = vrot.slane %v1128_v52, %v2224_v58  ;;  %v1143_v44 = vrot.slane %v1129_v39, %v2224_v58  ;;  %v1152_v45 = vrot.slane %v1144_v40, %v2224_v58  ;;  %v1159_v46 = vrot.slane %v1145_v42, %v2224_v58 }
 0x35b   : > { %s1231_s27 = sshll.u32 %s482_s26, 4  ;;  %s2489_s16 = sld [smem:[#allocation26_spill]]  ;;  %s2378_s27 = int_to_ptr.vmem [resolvable:$true] %s1231_s27 }
 0x35c   : > { %v1160_v47 = vcombine.low %v1136_v43, %v1152_v45  ;;  %v1161_v48 = vcombine.high %v1136_v43, %v1152_v45  ;;  %v1162_v49 = vcombine.low %v1143_v44, %v1159_v46  ;;  %v1163_v50 = vcombine.high %v1143_v44, %v1159_v46  ;;  %s1785_s14 = scalar_lea.vmem %s2378_s27, 256 }
 0x35d   : > { %p1786_p8 = scmp.ne.s32.totalorder %s2378_s27, %s1785_s14 }
 0x35e   : > { %v1164_v51 = vpack.c.bf16 %v1160_v47, %v1160_v47  ;;  %v1165_v53 = vpack.c.bf16 %v1161_v48, %v1161_v48  ;;  %v1166_v54 = vpack.c.bf16 %v1162_v49, %v1162_v49  ;;  %v1167_v55 = vpack.c.bf16 %v1163_v50, %v1163_v50 }
 0x35f   : > { %p1787_p1 = pnand %p1786_p8, %p2115_p10 }
 0x360   : > { %1168 = vst.msk [vmem:[%s482_s26] sm:$0xf] %vm733_vm2, %v1164_v51  ;;  %1169 = vst.msk [vmem:[%s482_s26 + $0x4] sm:$0xf] %vm733_vm2, %v1165_v53 }
 0x361   : > { %s2376_s28 = scalar_lea.hbm %s2489_s16, %s2255_s13  ;;  %1170 = vst.msk [vmem:[%s482_s26 + $0x8] sm:$0xf] %vm733_vm2, %v1166_v54  ;;  %1171 = vst.msk [vmem:[%s482_s26 + $0xc] sm:$0xf] %vm733_vm2, %v1167_v55  ;;  %p1788_p12 = pneg %p1787_p1 }
 0x362   : > { %s1898_s13 = smov [#allocation13]  }
 0x363   : > { %s1789_s12 = sshll.u32 %s1898_s13, 4  ;;  %s1790_s12 = int_to_ptr.vmem [resolvable:$false] %s1789_s12 }
 0x364   : > { %s1791_s20 = scalar_lea.vmem %s1790_s12, 512  ;;  %p1792_p13 = scmp.lt.s32.totalorder %s2378_s27, %s1790_s12 }
 0x365   : > { %p1793_p11 = scmp.lt.s32.totalorder %s1791_s20, %s1785_s14 }
 0x367   : > { %p1794_p6 = por %p1793_p11, %p1792_p13 }
 0x369   : > { %p1795_p3 = pnand %p1794_p6, %p1788_p12 }
 0x36b   : > { %1798 = shalt.err (!%p1795_p3)
}
 0x36c   : > { %s1799_s25 = scalar_lea.hbm %s2376_s28, 256  ;;  %s1803_s0 = scalar_lea.hbm %s2489_s16, 512 }
 0x36d   : > { %p1800_p5 = scmp.ne.s32.totalorder %s2376_s28, %s1799_s25  ;;  %p1804_p0 = scmp.lt.u32.totalorder %s2376_s28, %s2489_s16 }
 0x36e   : > { %p1805_p2 = scmp.lt.u32.totalorder %s1803_s0, %s1799_s25  ;;  %p1807_p8 = scmp.lt.u32.totalorder %s1799_s25, %s2376_s28 }
 0x36f   : > { %p1801_p7 = pnand %p1800_p5, %p2115_p10 }
 0x370   : > { %p1806_p4 = por %p1805_p2, %p1804_p0 }
 0x371   : > { %p1802_p9 = pneg %p1801_p7 }
 0x372   : > { %p1808_p1 = por %p1807_p8, %p1806_p4 }
 0x374   : > { %p1809_p12 = pnand %p1808_p1, %p1802_p9 }
 0x376   : > { %1812 = shalt.err (!%p1809_p12)
}
 0x377   : > { %1509 = dma.vmem_to_hbm [thread:$0]  (%p2115_p10), %s2378_s27, 256, %s2376_s28, %s2276_s15, %s2487_s23, %s2487_s23, %s2486_s17  }
 0x378 PF: > { %s2490_s14 = sld [smem:[#allocation19_spill]]  ;;  %s2491_s12 = sld [smem:[#allocation21_spill]] }
 0x379   : > { %p2493_p11 = scmp.ge.s32.totalorder %s1879_s22, 2 }
 0x37e   : > { %s1246_s20 = sand.u32 1, %s2490_s14   ;;  %p2492_p13 = scmp.ne.s32.totalorder %s2491_s12, 0 }
 0x37f   : > { %s1247_s25 = scalar_lea.sflag [#allocation4], %s1246_s20 }
 0x380   : > { %p1528_p6 = pnand %p2493_p11, %p2492_p13 }
 0x382   : > { %1850 = dma.done.wait (!%p1528_p6), %s1247_s25, 256  }
 0x383   : > { %1852 = vsyncadd (!%p1528_p6), %s1247_s25, 4294967040  ;;  %s2494_s10 = sadd.s32 4294967294, %s1879_s22  }
 0x384   : > { %s1255_s29 = sand.u32 1, %s2494_s10  }
 0x385   : > { %s1256_s26 = scalar_lea.sflag [#allocation12], %s1255_s29 }
 0x386   : > { %1854 = dma.done.wait (!%p1528_p6), %s1256_s26, 512  }
 0x387   : > { %1856 = vsyncadd (!%p1528_p6), %s1256_s26, 4294966784  ;;  %s33_s22 = sadd.s32 1, %s1879_s22   ;;  %s2495_s17 = smov %s1863_s18 }
 0x388   : > { %p30_p10 = scmp.ge.s32.totalorder %s33_s22, 4   ;;  %s2496_s18 = smov %s1867_s19 }
 0x389   : > { %s2497_s19 = smov %s2127_s24  ;;  %s2498_s20 = smov %s1875_s21 }
 0x38a   : > { %s2499_s21 = smov %s2501_s30  ;;  %32 = sbr.rel (!%p30_p10) target bundleno = 16 (0x10), region = 145 }
 0x391   :  { %1270 = vsyncpa [#allocation3], 1 }
 0x392   :  { %1272 = vsyncpa [#allocation3 + $0x1], 1 }
 0x393   :  { %1273 = vsyncpa [#allocation6], 1 }
 0x394   :  { %1274 = vsyncpa [#allocation9], 1 }
 0x395   :  { %1275 = vsyncpa [#allocation4], 1 }
 0x396   :  { %1277 = vsyncpa [#allocation4 + $0x1], 1 }
 0x397   :  { %1278 = vsyncpa [#allocation12], 1 }
 0x398   :  { %1280 = vsyncpa [#allocation12 + $0x1], 1 }

</bundles_post_ra>
